<compile_context>
chip_gen: v7x
topology: tpu7x:2x2x1
jax: 0.10.0
libtpu: 0.0.40
codegen_flags: <defaults>
</compile_context>

<pallas_src>
import math

import jax
import jax.numpy as jnp
from jax.experimental import pallas as pl
from jax.experimental.pallas import tpu as pltpu

LANE = 128


def _round_up(n, m):
    return ((n + m - 1) // m) * m


def _mlp_kernel(x_ref, w1_ref, b1_ref, w2_ref, b2_ref,
                w3_ref, b3_ref, w4_ref, b4_ref, o_ref):
    # fc1 + ReLU  (bf16 MXU inputs, f32 accumulation / epilogue)
    h = jnp.dot(x_ref[...], w1_ref[...], preferred_element_type=jnp.float32)
    h = jnp.maximum(h + b1_ref[...], 0.0)
    # fc2 + ReLU
    h = jnp.dot(h.astype(jnp.bfloat16), w2_ref[...],
                preferred_element_type=jnp.float32)
    h = jnp.maximum(h + b2_ref[...], 0.0)
    # fc3 + ReLU
    h = jnp.dot(h.astype(jnp.bfloat16), w3_ref[...],
                preferred_element_type=jnp.float32)
    h = jnp.maximum(h + b3_ref[...], 0.0)
    # out (logits, no activation) -- lane-dense (128-wide) store
    logits = jnp.dot(h.astype(jnp.bfloat16), w4_ref[...],
                     preferred_element_type=jnp.float32)
    o_ref[...] = (logits + b4_ref[...]).astype(o_ref.dtype)


def init_params(key, input_size, output_size):
    """nn.Linear-style init (uniform +/- 1/sqrt(fan_in)).

    Weights are stored transposed vs torch ((in, out)), zero-padded to 128-lane
    multiples, and cast to bf16.  Biases are (1, out_pad) f32 (zero in the pad).
    """
    h1, h2, h3 = 64, 32, 16
    dims = [(input_size, h1), (h1, h2), (h2, h3), (h3, output_size)]
    in_pad0 = _round_up(input_size, LANE)
    pads_in = [in_pad0, LANE, LANE, LANE]
    pads_out = [LANE, LANE, LANE, _round_up(output_size, LANE)]

    params = []
    for (fan_in, fan_out), pin, pout in zip(dims, pads_in, pads_out):
        key, kw, kb = jax.random.split(key, 3)
        bound = 1.0 / math.sqrt(fan_in)
        w = jax.random.uniform(kw, (fan_in, fan_out), jnp.float32, -bound, bound)
        b = jax.random.uniform(kb, (fan_out,), jnp.float32, -bound, bound)
        w_pad = (jnp.zeros((pin, pout), jnp.float32)
                 .at[:fan_in, :fan_out].set(w)).astype(jnp.bfloat16)
        b_pad = jnp.zeros((1, pout), jnp.float32).at[0, :fan_out].set(b)
        params.append((w_pad, b_pad))
    return params


def fixed_fcn_forward(x, params, output_size, tb=None):
    """x: (B, ...) -> flattened to (B, input_size). Returns (B, output_size) f32."""
    B = x.shape[0]
    x2d = x.reshape(B, -1)
    in_size = x2d.shape[1]

    (w1, b1), (w2, b2), (w3, b3), (w4, b4) = params
    k_pad = w1.shape[0]          # padded input size (multiple of 128)
    n_pad = w4.shape[1]          # padded output size (multiple of 128)

    # Batch tile: multiple of 16 (bf16 sublane packing), large enough to feed
    # the MXU, small enough that 2x double-buffered (TB, k_pad) bf16 tiles fit
    # comfortably in scoped VMEM on every generation (v7x included).
    if tb is None:
        tb = min(512, max(16, _round_up(B, 16)))
    tb = _round_up(tb, 16)
    b_pad = _round_up(max(B, tb), tb)

    # Pad batch + feature dims with zeros (inert), cast activations to bf16.
    x_pad = (jnp.zeros((b_pad, k_pad), jnp.bfloat16)
             .at[:B, :in_size].set(x2d.astype(jnp.bfloat16)))

    n_tiles = b_pad // tb

    flops = 2 * b_pad * (k_pad * LANE + 3 * LANE * LANE)
    bytes_accessed = (x_pad.size * 2
                      + sum(w.size * 2 + b.size * 4 for (w, b) in params)
                      + b_pad * n_pad * 4)

    resident = lambda shape: pl.BlockSpec(shape, lambda i: (0,) * len(shape))

    out_pad = pl.pallas_call(
        _mlp_kernel,
        out_shape=jax.ShapeDtypeStruct((b_pad, n_pad), jnp.float32),
        grid=(n_tiles,),
        in_specs=[
            pl.BlockSpec((tb, k_pad), lambda i: (i, 0)),   # x: streamed per tile
            resident(w1.shape), resident(b1.shape),        # weights/biases resident
            resident(w2.shape), resident(b2.shape),
            resident(w3.shape), resident(b3.shape),
            resident(w4.shape), resident(b4.shape),
        ],
        out_specs=pl.BlockSpec((tb, n_pad), lambda i: (i, 0)),
        compiler_params=pltpu.CompilerParams(
            dimension_semantics=("parallel",)),
        cost_estimate=pl.CostEstimate(
            flops=flops, transcendentals=0, bytes_accessed=bytes_accessed),
    )(x_pad, w1, b1, w2, b2, w3, b3, w4, b4)

    return out_pad[:B, :output_size]


def _reference_forward(x, params, output_size):
    """Plain-JAX reference using the same padded bf16 params / cast pattern."""
    B = x.shape[0]
    x2d = x.reshape(B, -1).astype(jnp.bfloat16)
    in_size = x2d.shape[1]
    (w1, b1), (w2, b2), (w3, b3), (w4, b4) = params
    k_pad = w1.shape[0]
    xp = jnp.zeros((B, k_pad), jnp.bfloat16).at[:, :in_size].set(x2d)

    h = jnp.maximum(jnp.dot(xp, w1, preferred_element_type=jnp.float32) + b1, 0.0)
    h = jnp.maximum(jnp.dot(h.astype(jnp.bfloat16), w2,
                            preferred_element_type=jnp.float32) + b2, 0.0)
    h = jnp.maximum(jnp.dot(h.astype(jnp.bfloat16), w3,
                            preferred_element_type=jnp.float32) + b3, 0.0)
    out = jnp.dot(h.astype(jnp.bfloat16), w4,
                  preferred_element_type=jnp.float32) + b4
    return out[:, :output_size]


if __name__ == "__main__":
    key = jax.random.PRNGKey(0)
    k_x, k_p = jax.random.split(key)

    # Image-like input (2, 4, 16, 16) -> input_size = 4*16*16 = 1024
    B, C, H, W = 2, 4, 16, 16
    input_size = C * H * W
    output_size = 10

    x = jax.random.normal(k_x, (B, C, H, W), jnp.float32)
    params = init_params(k_p, input_size, output_size)

    logits = fixed_fcn_forward(x, params, output_size)
    logits = jax.block_until_ready(logits)

    ref = _reference_forward(x, params, output_size)
    assert logits.shape == (B, output_size), logits.shape
    assert jnp.allclose(logits, ref, atol=1e-2, rtol=1e-2), "mismatch vs reference"

    print("KERNEL_OK")
</pallas_src>

<mosaic_0001>
module attributes {stable_mosaic.version = 11 : i64} {
  func.func @_mlp_kernel(%arg0: i32, %arg1: memref<16x1024xbf16, #tpu.memory_space<vmem>>, %arg2: memref<1024x128xbf16, #tpu.memory_space<vmem>>, %arg3: memref<1x128xf32, #tpu.memory_space<vmem>>, %arg4: memref<128x128xbf16, #tpu.memory_space<vmem>>, %arg5: memref<1x128xf32, #tpu.memory_space<vmem>>, %arg6: memref<128x128xbf16, #tpu.memory_space<vmem>>, %arg7: memref<1x128xf32, #tpu.memory_space<vmem>>, %arg8: memref<128x128xbf16, #tpu.memory_space<vmem>>, %arg9: memref<1x128xf32, #tpu.memory_space<vmem>>, %arg10: memref<16x128xf32, #tpu.memory_space<vmem>>) attributes {dimension_semantics = [#tpu.dimension_semantics<parallel>], iteration_bounds = array<i64: 1>, scalar_prefetch = 0 : i64, scratch_operands = 0 : i64, tpu.core_type = #tpu.core_type<tc>, window_params = [{transform_indices = @transform_0, window_bounds = array<i64: 16, 1024>}, {pipeline_mode = #tpu.pipeline_mode<synchronous>, transform_indices = @transform_1, window_bounds = array<i64: 1024, 128>}, {pipeline_mode = #tpu.pipeline_mode<synchronous>, transform_indices = @transform_2, window_bounds = array<i64: 1, 128>}, {pipeline_mode = #tpu.pipeline_mode<synchronous>, transform_indices = @transform_3, window_bounds = array<i64: 128, 128>}, {pipeline_mode = #tpu.pipeline_mode<synchronous>, transform_indices = @transform_4, window_bounds = array<i64: 1, 128>}, {pipeline_mode = #tpu.pipeline_mode<synchronous>, transform_indices = @transform_5, window_bounds = array<i64: 128, 128>}, {pipeline_mode = #tpu.pipeline_mode<synchronous>, transform_indices = @transform_6, window_bounds = array<i64: 1, 128>}, {pipeline_mode = #tpu.pipeline_mode<synchronous>, transform_indices = @transform_7, window_bounds = array<i64: 128, 128>}, {pipeline_mode = #tpu.pipeline_mode<synchronous>, transform_indices = @transform_8, window_bounds = array<i64: 1, 128>}, {transform_indices = @transform_9, window_bounds = array<i64: 16, 128>}]} {
    %c0 = arith.constant 0 : index
    %c0_0 = arith.constant 0 : index
    %0 = vector.load %arg1[%c0, %c0_0] : memref<16x1024xbf16, #tpu.memory_space<vmem>>, vector<16x1024xbf16>
    %c0_1 = arith.constant 0 : index
    %c0_2 = arith.constant 0 : index
    %1 = vector.load %arg2[%c0_1, %c0_2] : memref<1024x128xbf16, #tpu.memory_space<vmem>>, vector<1024x128xbf16>
    %cst = arith.constant dense<0.000000e+00> : vector<16x128xf32>
    %2 = tpu.matmul %0, %1, %cst {dimension_numbers = #tpu.dot_dimension_numbers<[1], [0], [0], [1], [0, 0, 1, 1], [], []>} : vector<16x1024xbf16>, vector<1024x128xbf16>, vector<16x128xf32> -> vector<16x128xf32>
    %c0_3 = arith.constant 0 : index
    %c0_4 = arith.constant 0 : index
    %3 = vector.load %arg3[%c0_3, %c0_4] : memref<1x128xf32, #tpu.memory_space<vmem>>, vector<1x128xf32>
    %4 = vector.broadcast %3 : vector<1x128xf32> to vector<16x128xf32>
    %5 = arith.addf %2, %4 : vector<16x128xf32>
    %cst_5 = arith.constant 0.000000e+00 : f32
    %6 = vector.broadcast %cst_5 : f32 to vector<16x128xf32>
    %7 = arith.maximumf %5, %6 : vector<16x128xf32>
    %8 = arith.truncf %7 : vector<16x128xf32> to vector<16x128xbf16>
    %c0_6 = arith.constant 0 : index
    %c0_7 = arith.constant 0 : index
    %9 = vector.load %arg4[%c0_6, %c0_7] : memref<128x128xbf16, #tpu.memory_space<vmem>>, vector<128x128xbf16>
    %cst_8 = arith.constant dense<0.000000e+00> : vector<16x128xf32>
    %10 = tpu.matmul %8, %9, %cst_8 {dimension_numbers = #tpu.dot_dimension_numbers<[1], [0], [0], [1], [0, 0, 1, 1], [], []>} : vector<16x128xbf16>, vector<128x128xbf16>, vector<16x128xf32> -> vector<16x128xf32>
    %c0_9 = arith.constant 0 : index
    %c0_10 = arith.constant 0 : index
    %11 = vector.load %arg5[%c0_9, %c0_10] : memref<1x128xf32, #tpu.memory_space<vmem>>, vector<1x128xf32>
    %12 = vector.broadcast %11 : vector<1x128xf32> to vector<16x128xf32>
    %13 = arith.addf %10, %12 : vector<16x128xf32>
    %cst_11 = arith.constant 0.000000e+00 : f32
    %14 = vector.broadcast %cst_11 : f32 to vector<16x128xf32>
    %15 = arith.maximumf %13, %14 : vector<16x128xf32>
    %16 = arith.truncf %15 : vector<16x128xf32> to vector<16x128xbf16>
    %c0_12 = arith.constant 0 : index
    %c0_13 = arith.constant 0 : index
    %17 = vector.load %arg6[%c0_12, %c0_13] : memref<128x128xbf16, #tpu.memory_space<vmem>>, vector<128x128xbf16>
    %cst_14 = arith.constant dense<0.000000e+00> : vector<16x128xf32>
    %18 = tpu.matmul %16, %17, %cst_14 {dimension_numbers = #tpu.dot_dimension_numbers<[1], [0], [0], [1], [0, 0, 1, 1], [], []>} : vector<16x128xbf16>, vector<128x128xbf16>, vector<16x128xf32> -> vector<16x128xf32>
    %c0_15 = arith.constant 0 : index
    %c0_16 = arith.constant 0 : index
    %19 = vector.load %arg7[%c0_15, %c0_16] : memref<1x128xf32, #tpu.memory_space<vmem>>, vector<1x128xf32>
    %20 = vector.broadcast %19 : vector<1x128xf32> to vector<16x128xf32>
    %21 = arith.addf %18, %20 : vector<16x128xf32>
    %cst_17 = arith.constant 0.000000e+00 : f32
    %22 = vector.broadcast %cst_17 : f32 to vector<16x128xf32>
    %23 = arith.maximumf %21, %22 : vector<16x128xf32>
    %24 = arith.truncf %23 : vector<16x128xf32> to vector<16x128xbf16>
    %c0_18 = arith.constant 0 : index
    %c0_19 = arith.constant 0 : index
    %25 = vector.load %arg8[%c0_18, %c0_19] : memref<128x128xbf16, #tpu.memory_space<vmem>>, vector<128x128xbf16>
    %cst_20 = arith.constant dense<0.000000e+00> : vector<16x128xf32>
    %26 = tpu.matmul %24, %25, %cst_20 {dimension_numbers = #tpu.dot_dimension_numbers<[1], [0], [0], [1], [0, 0, 1, 1], [], []>} : vector<16x128xbf16>, vector<128x128xbf16>, vector<16x128xf32> -> vector<16x128xf32>
    %c0_21 = arith.constant 0 : index
    %c0_22 = arith.constant 0 : index
    %27 = vector.load %arg9[%c0_21, %c0_22] : memref<1x128xf32, #tpu.memory_space<vmem>>, vector<1x128xf32>
    %28 = vector.broadcast %27 : vector<1x128xf32> to vector<16x128xf32>
    %29 = arith.addf %26, %28 : vector<16x128xf32>
    %c0_23 = arith.constant 0 : index
    %c0_24 = arith.constant 0 : index
    %30 = vector.load %arg10[%c0_23, %c0_24] : memref<16x128xf32, #tpu.memory_space<vmem>>, vector<16x128xf32>
    tpu.vector_store %arg10[%c0_23, %c0_24], %29 {strides = array<i32>} : memref<16x128xf32, #tpu.memory_space<vmem>>, vector<16x128xf32>,
    return
  }
  func.func @transform_0(%arg0: i32) -> (i32, i32) {
    %c0_i32 = arith.constant 0 : i32
    %c0_i32_0 = arith.constant 0 : i32
    return %arg0, %c0_i32 : i32, i32
  }
  func.func @transform_1(%arg0: i32) -> (i32, i32) {
    %c0_i32 = arith.constant 0 : i32
    %c0_i32_0 = arith.constant 0 : i32
    %c0_i32_1 = arith.constant 0 : i32
    return %c0_i32, %c0_i32_0 : i32, i32
  }
  func.func @transform_2(%arg0: i32) -> (i32, i32) {
    %c0_i32 = arith.constant 0 : i32
    %c0_i32_0 = arith.constant 0 : i32
    %c0_i32_1 = arith.constant 0 : i32
    return %c0_i32, %c0_i32_0 : i32, i32
  }
  func.func @transform_3(%arg0: i32) -> (i32, i32) {
    %c0_i32 = arith.constant 0 : i32
    %c0_i32_0 = arith.constant 0 : i32
    %c0_i32_1 = arith.constant 0 : i32
    return %c0_i32, %c0_i32_0 : i32, i32
  }
  func.func @transform_4(%arg0: i32) -> (i32, i32) {
    %c0_i32 = arith.constant 0 : i32
    %c0_i32_0 = arith.constant 0 : i32
    %c0_i32_1 = arith.constant 0 : i32
    return %c0_i32, %c0_i32_0 : i32, i32
  }
  func.func @transform_5(%arg0: i32) -> (i32, i32) {
    %c0_i32 = arith.constant 0 : i32
    %c0_i32_0 = arith.constant 0 : i32
    %c0_i32_1 = arith.constant 0 : i32
    return %c0_i32, %c0_i32_0 : i32, i32
  }
  func.func @transform_6(%arg0: i32) -> (i32, i32) {
    %c0_i32 = arith.constant 0 : i32
    %c0_i32_0 = arith.constant 0 : i32
    %c0_i32_1 = arith.constant 0 : i32
    return %c0_i32, %c0_i32_0 : i32, i32
  }
  func.func @transform_7(%arg0: i32) -> (i32, i32) {
    %c0_i32 = arith.constant 0 : i32
    %c0_i32_0 = arith.constant 0 : i32
    %c0_i32_1 = arith.constant 0 : i32
    return %c0_i32, %c0_i32_0 : i32, i32
  }
  func.func @transform_8(%arg0: i32) -> (i32, i32) {
    %c0_i32 = arith.constant 0 : i32
    %c0_i32_0 = arith.constant 0 : i32
    %c0_i32_1 = arith.constant 0 : i32
    return %c0_i32, %c0_i32_0 : i32, i32
  }
  func.func @transform_9(%arg0: i32) -> (i32, i32) {
    %c0_i32 = arith.constant 0 : i32
    %c0_i32_0 = arith.constant 0 : i32
    return %arg0, %c0_i32 : i32, i32
  }
}

</mosaic_0001>

<bundles_post_ra>
// kernel: tpu_custom_call.1
= control target key start
LH: loop header
LB: loop body
LE: loop exit
PB: predicated region body
PF: predicated region fallthrough
CT: control target
= control target key end

     0   :  { %14 = vsyncpa [#allocation3], 0  ;;  %s1906_s0 = inlined_call_operand.hbm [shape: bf16[16,1024], index: 0, kind: input, shape index: {}]   ;;  %s1907_s1 = inlined_call_operand.hbm [shape: bf16[1024,128], index: 1, kind: input, shape index: {}]   ;;  %s1908_s2 = inlined_call_operand.vmem [shape: f32[1,128], index: 2, kind: input, shape index: {}]   ;;  %s1909_s3 = inlined_call_operand.hbm [shape: bf16[128,128], index: 3, kind: input, shape index: {}]   ;;  %s1910_s4 = inlined_call_operand.vmem [shape: f32[1,128], index: 4, kind: input, shape index: {}]   ;;  %s1911_s5 = inlined_call_operand.hbm [shape: bf16[128,128], index: 5, kind: input, shape index: {}]   ;;  %s1912_s6 = inlined_call_operand.vmem [shape: f32[1,128], index: 6, kind: input, shape index: {}]   ;;  %s1913_s7 = inlined_call_operand.hbm [shape: bf16[128,128], index: 7, kind: input, shape index: {}]   ;;  %s1914_s8 = inlined_call_operand.vmem [shape: f32[1,128], index: 8, kind: input, shape index: {}]   ;;  %s1915_s9 = inlined_call_operand.hbm [shape: f32[16,128], index: 9, kind: output, shape index: {}]  }
   0x1   :  { %15 = vsyncpa [#allocation6], 0 }
   0x2   :  { %16 = vsyncpa [#allocation9], 0 }
   0x3   :  { %17 = vsyncpa [#allocation4], 0  ;;  %s1716_s30 = smov [#allocation5]   ;;  %s1576_s13 = scalar_lea.hbm %s1907_s1, 8192 }
   0x4   :  { %s35_s10 = sshll.u32 %s1716_s30, 4  ;;  %p1577_p0 = scmp.ne.s32.totalorder %s1907_s1, %s1576_s13  ;;  %s36_s10 = int_to_ptr.vmem [resolvable:$true] %s35_s10 }
   0x5   :  { %p1580_p1 = scmp.lt.u32.totalorder %s1576_s13, %s1907_s1 }
   0x7   :  { %p1582_p2 = pnand %p1580_p1, %p1577_p0 }
   0x9   :  { %1585 = shalt.err (!%p1582_p2)
}
   0xa   :  { %s1586_s18 = scalar_lea.vmem %s36_s10, 8192  ;;  %p1591_p4 = scmp.lt.s32.totalorder %s36_s10, %s36_s10 }
   0xb   :  { %p1587_p3 = scmp.ne.s32.totalorder %s36_s10, %s1586_s18  ;;  %p1592_p5 = scmp.lt.s32.totalorder %s1586_s18, %s1586_s18 }
   0xd   :  { %p1593_p6 = por %p1592_p5, %p1591_p4 }
   0xf   :  { %p1594_p7 = pnand %p1593_p6, %p1587_p3 }
  0x11   :  { %1597 = shalt.err (!%p1594_p7)
}
  0x12   :  { %s1717_s19 = smov 64   ;;  %s1718_s20 = smov 4  }
  0x13   :  { %41 = dma.hbm_to_vmem [thread:$0]  %s1907_s1, 8192, %s36_s10, [#allocation6], %s1717_s19, %s1717_s19, %s1718_s20  }
  0x14   :  { %s1719_s23 = smov [#allocation8]   ;;  %s1720_s25 = smov [#allocation2]  }
  0x15   :  { %s63_s24 = sshll.u32 %s1719_s23, 4  ;;  %s23_s26 = sshll.u32 %s1720_s25, 4  ;;  %s64_s24 = int_to_ptr.vmem [resolvable:$true] %s63_s24  ;;  %s24_s26 = int_to_ptr.vmem [resolvable:$true] %s23_s26 }
  0x16   :  { %s1598_s29 = scalar_lea.hbm %s1911_s5, 1024 }
  0x17   :  { %p1599_p8 = scmp.ne.s32.totalorder %s1911_s5, %s1598_s29  ;;  %p1602_p9 = scmp.lt.u32.totalorder %s1598_s29, %s1911_s5 }
  0x19   :  { %p1604_p10 = pnand %p1602_p9, %p1599_p8 }
  0x1b   :  { %1607 = shalt.err (!%p1604_p10)
}
  0x1c   :  { %s1608_s1 = scalar_lea.vmem %s64_s24, 1024  ;;  %p1613_p12 = scmp.lt.s32.totalorder %s64_s24, %s64_s24 }
  0x1d   :  { %p1609_p11 = scmp.ne.s32.totalorder %s64_s24, %s1608_s1  ;;  %p1614_p13 = scmp.lt.s32.totalorder %s1608_s1, %s1608_s1 }
  0x1f   :  { %p1615_p0 = por %p1614_p13, %p1613_p12 }
  0x21   :  { %p1616_p1 = pnand %p1615_p0, %p1609_p11 }
  0x23   :  { %1619 = shalt.err (!%p1616_p1)
}
  0x24   :  { %69 = dma.hbm_to_vmem [thread:$0]  %s1911_s5, 1024, %s64_s24, [#allocation9], %s1717_s19, %s1717_s19, %s1718_s20  }
  0x25   :  { %s1620_s17 = scalar_lea.hbm %s1906_s0, 1024 }
  0x26   :  { %p1621_p2 = scmp.ne.s32.totalorder %s1906_s0, %s1620_s17  ;;  %p1624_p3 = scmp.lt.u32.totalorder %s1620_s17, %s1906_s0 }
  0x28   :  { %p1626_p4 = pnand %p1624_p3, %p1621_p2 }
  0x2a   :  { %1629 = shalt.err (!%p1626_p4)
}
  0x2b   :  { %s1630_s25 = scalar_lea.vmem %s24_s26, 1024  ;;  %p1635_p6 = scmp.lt.s32.totalorder %s24_s26, %s24_s26 }
  0x2c   :  { %p1631_p5 = scmp.ne.s32.totalorder %s24_s26, %s1630_s25  ;;  %p1636_p7 = scmp.lt.s32.totalorder %s1630_s25, %s1630_s25 }
  0x2e   :  { %p1637_p8 = por %p1636_p7, %p1635_p6 }
  0x30   :  { %p1638_p9 = pnand %p1637_p8, %p1631_p5 }
  0x32   :  { %1641 = shalt.err (!%p1638_p9)
}
  0x33   :  { %s1721_s5 = smov 512   ;;  %s1722_s24 = smov 32  }
  0x34   :  { %29 = dma.hbm_to_vmem [thread:$0]  %s1906_s0, 1024, %s24_s26, [#allocation3], %s1721_s5, %s1721_s5, %s1722_s24  }
  0x35   :  { %s1723_s29 = smov [#allocation7]   ;;  %s1724_s11 = smov [#allocation10]  }
  0x36   :  { %s49_s30 = sshll.u32 %s1723_s29, 4  ;;  %s77_s12 = sshll.u32 %s1724_s11, 4  ;;  %s50_s30 = int_to_ptr.vmem [resolvable:$true] %s49_s30  ;;  %s78_s12 = int_to_ptr.vmem [resolvable:$true] %s77_s12 }
  0x37   :  { %s1642_s10 = scalar_lea.hbm %s1909_s3, 1024 }
  0x38   :  { %p1643_p10 = scmp.ne.s32.totalorder %s1909_s3, %s1642_s10  ;;  %p1646_p11 = scmp.lt.u32.totalorder %s1642_s10, %s1909_s3 }
  0x3a   :  { %p1648_p12 = pnand %p1646_p11, %p1643_p10 }
  0x3c   :  { %1651 = shalt.err (!%p1648_p12)
}
  0x3d   :  { %s1652_s0 = scalar_lea.vmem %s50_s30, 1024  ;;  %p1657_p0 = scmp.lt.s32.totalorder %s50_s30, %s50_s30 }
  0x3e   :  { %p1653_p13 = scmp.ne.s32.totalorder %s50_s30, %s1652_s0  ;;  %p1658_p1 = scmp.lt.s32.totalorder %s1652_s0, %s1652_s0 }
  0x40   :  { %p1659_p2 = por %p1658_p1, %p1657_p0 }
  0x42   :  { %p1660_p3 = pnand %p1659_p2, %p1653_p13 }
  0x44   :  { %1663 = shalt.err (!%p1660_p3)
}
  0x45   :  { %55 = dma.hbm_to_vmem [thread:$0]  %s1909_s3, 1024, %s50_s30, [#allocation6], %s1717_s19, %s1717_s19, %s1718_s20  }
  0x46   :  { %s1664_s23 = scalar_lea.hbm %s1913_s7, 1024 }
  0x47   :  { %p1665_p4 = scmp.ne.s32.totalorder %s1913_s7, %s1664_s23  ;;  %p1668_p5 = scmp.lt.u32.totalorder %s1664_s23, %s1913_s7 }
  0x49   :  { %p1670_p6 = pnand %p1668_p5, %p1665_p4 }
  0x4b   :  { %1673 = shalt.err (!%p1670_p6)
}
  0x4c   :  { %s1674_s28 = scalar_lea.vmem %s78_s12, 1024  ;;  %p1679_p8 = scmp.lt.s32.totalorder %s78_s12, %s78_s12 }
  0x4d   :  { %p1675_p7 = scmp.ne.s32.totalorder %s78_s12, %s1674_s28  ;;  %p1680_p9 = scmp.lt.s32.totalorder %s1674_s28, %s1674_s28 }
  0x4f   :  { %p1681_p10 = por %p1680_p9, %p1679_p8 }
  0x51   :  { %p1682_p11 = pnand %p1681_p10, %p1675_p7 }
  0x53   :  { %1685 = shalt.err (!%p1682_p11)
}
  0x54   :  { %83 = dma.hbm_to_vmem [thread:$0]  %s1913_s7, 1024, %s78_s12, [#allocation9], %s1717_s19, %s1717_s19, %s1718_s20  }
  0x55   :  { %1708 = dma.done.wait [#allocation3], 1024  }
  0x56   :  { %1709 = vsyncadd [#allocation3], 4294966272 }
  0x57   :  { %1710 = dma.done.wait [#allocation6], 9216  }
  0x58   :  { %1711 = vsyncadd [#allocation6], 4294958080 }
  0x59   :  { %1712 = dma.done.wait [#allocation9], 2048  }
  0x5a   :  { %1713 = vsyncadd [#allocation9], 4294965248  ;;  %v1488_v0 = vld [vmem:[#allocation5 + $0x40] sm:$0xff]   ;;  %v1492_v4 = vld [vmem:[#allocation5 + $0x48] sm:$0xff]   ;;  %vm1726_vm0 = vmmov 0   ;;  %s1727_s13 = smov [#allocation11]  }
  0x5b   :  { %v1489_v1 = vld [vmem:[#allocation5 + $0xc0] sm:$0xff]   ;;  %1299 = vmatprep.subr.bf16.mxu0 %v1488_v0  ;;  %v1493_v5 = vld [vmem:[#allocation5 + $0xc8] sm:$0xff]   ;;  %v1496_v8 = vld [vmem:[#allocation5 + $0x50] sm:$0xff]   ;;  %s1185_s1 = sshll.u32 %s1727_s13, 4  ;;  %s1186_s1 = int_to_ptr.vmem [resolvable:$true] %s1185_s1 }
  0x5c   :  { %v1490_v2 = vld [vmem:[#allocation5] sm:$0xff]   ;;  %1321 = vmatprep.subr.bf16.mxu1 %v1489_v1  ;;  %v1494_v6 = vld [vmem:[#allocation5 + $0x8] sm:$0xff]   ;;  %v1497_v9 = vld [vmem:[#allocation5 + $0xd0] sm:$0xff]   ;;  %p1691_p13 = scmp.lt.s32.totalorder %s1186_s1, %s1186_s1 }
  0x5d   :  { %v1491_v3 = vld [vmem:[#allocation5 + $0x80] sm:$0xff]   ;;  %1300 = vmatpush3.bf16.msra.mxu0 %v1490_v2  ;;  %v1495_v7 = vld [vmem:[#allocation5 + $0x88] sm:$0xff]   ;;  %v1498_v10 = vld [vmem:[#allocation5 + $0x10] sm:$0xff]  }
  0x5e   :  { %1322 = vmatpush3.bf16.msra.mxu1 %v1491_v3  ;;  %1301 = vmatprep.subr.bf16.mxu0 %v1492_v4  ;;  %v1499_v11 = vld [vmem:[#allocation5 + $0x90] sm:$0xff]   ;;  %v1500_v12 = vld [vmem:[#allocation5 + $0x58] sm:$0xff]   ;;  %v1504_v16 = vld [vmem:[#allocation5 + $0x60] sm:$0xff]  }
  0x5f   :  { %1323 = vmatprep.subr.bf16.mxu1 %v1493_v5  ;;  %v1501_v13 = vld [vmem:[#allocation5 + $0xd8] sm:$0xff]   ;;  %v1505_v17 = vld [vmem:[#allocation5 + $0xe0] sm:$0xff]   ;;  %v1508_v20 = vld [vmem:[#allocation5 + $0x68] sm:$0xff]  }
  0x60   :  { %v1502_v14 = vld [vmem:[#allocation5 + $0x18] sm:$0xff]   ;;  %v1506_v18 = vld [vmem:[#allocation5 + $0x20] sm:$0xff]   ;;  %v1509_v21 = vld [vmem:[#allocation5 + $0xe8] sm:$0xff]  }
  0x61   :  { %1302 = vmatpush3.bf16.msra.mxu0 %v1494_v6  ;;  %v1503_v15 = vld [vmem:[#allocation5 + $0x98] sm:$0xff]   ;;  %v1507_v19 = vld [vmem:[#allocation5 + $0xa0] sm:$0xff]   ;;  %v1510_v22 = vld [vmem:[#allocation5 + $0x28] sm:$0xff]  }
  0x62   :  { %1324 = vmatpush3.bf16.msra.mxu1 %v1495_v7  ;;  %1303 = vmatprep.subr.bf16.mxu0 %v1496_v8  ;;  %v1511_v23 = vld [vmem:[#allocation5 + $0xa8] sm:$0xff]   ;;  %v1512_v24 = vld [vmem:[#allocation5 + $0x70] sm:$0xff]   ;;  %v1516_v28 = vld [vmem:[#allocation5 + $0x78] sm:$0xff]  }
  0x63   :  { %1325 = vmatprep.subr.bf16.mxu1 %v1497_v9  ;;  %v1513_v25 = vld [vmem:[#allocation5 + $0xf0] sm:$0xff]   ;;  %v1517_v29 = vld [vmem:[#allocation5 + $0xf8] sm:$0xff]   ;;  %v102_v32 = vld [vmem:[#allocation2] sm:$0xff] }
  0x64   :  { %v1514_v26 = vld [vmem:[#allocation5 + $0x30] sm:$0xff]   ;;  %v1518_v30 = vld [vmem:[#allocation5 + $0x38] sm:$0xff]   ;;  %v106_v33 = vld [vmem:[#allocation2 + $0x20] sm:$0xff] }
  0x65   :  { %1304 = vmatpush3.bf16.msra.mxu0 %v1498_v10  ;;  %v1515_v27 = vld [vmem:[#allocation5 + $0xb0] sm:$0xff]   ;;  %v1519_v31 = vld [vmem:[#allocation5 + $0xb8] sm:$0xff]   ;;  %v103_v34 = vld [vmem:[#allocation2 + $0x8] sm:$0xff]  ;;  %v1200_v35 = vcombine.low %v102_v32, %v106_v33  ;;  %v1201_v36 = vcombine.high %v102_v32, %v106_v33 }
  0x66   :  { %1326 = vmatpush3.bf16.msra.mxu1 %v1499_v11  ;;  %1305 = vmatprep.subr.bf16.mxu0 %v1500_v12  ;;  %v107_v37 = vld [vmem:[#allocation2 + $0x28] sm:$0xff]  ;;  %v1520_v40 = vld [vmem:[#allocation5 + $0x140] sm:$0xff]   ;;  %v1528_v48 = vld [vmem:[#allocation5 + $0x150] sm:$0xff]  }
  0x67   :  { %1327 = vmatprep.subr.bf16.mxu1 %v1501_v13  ;;  %v1202_v38 = vcombine.low %v103_v34, %v107_v37  ;;  %v1203_v39 = vcombine.high %v103_v34, %v107_v37  ;;  %701 = vmatprep.mubr.bf16.mxu0 %v1201_v36  ;;  %v1521_v41 = vld [vmem:[#allocation5 + $0x1c0] sm:$0xff]   ;;  %v1524_v44 = vld [vmem:[#allocation5 + $0x148] sm:$0xff]   ;;  %v1529_v49 = vld [vmem:[#allocation5 + $0x1d0] sm:$0xff]  }
  0x68   :  { %v1522_v42 = vld [vmem:[#allocation5 + $0x100] sm:$0xff]   ;;  %v1525_v45 = vld [vmem:[#allocation5 + $0x1c8] sm:$0xff]   ;;  %v1530_v50 = vld [vmem:[#allocation5 + $0x110] sm:$0xff]  }
  0x69   :  { %1306 = vmatpush3.bf16.msra.mxu0 %v1502_v14  ;;  %742 = vmatprep.mubr.bf16.mxu1 %v1203_v39  ;;  %v1523_v43 = vld [vmem:[#allocation5 + $0x180] sm:$0xff]   ;;  %v1526_v46 = vld [vmem:[#allocation5 + $0x108] sm:$0xff]   ;;  %v1531_v51 = vld [vmem:[#allocation5 + $0x190] sm:$0xff]  }
  0x6a   :  { %1328 = vmatpush3.bf16.msra.mxu1 %v1503_v15  ;;  %1307 = vmatprep.subr.bf16.mxu0 %v1504_v16  ;;  %v1527_v47 = vld [vmem:[#allocation5 + $0x188] sm:$0xff]   ;;  %v1532_v52 = vld [vmem:[#allocation5 + $0x158] sm:$0xff]   ;;  %v1536_v56 = vld [vmem:[#allocation5 + $0x160] sm:$0xff]  }
  0x6b   :  { %1329 = vmatprep.subr.bf16.mxu1 %v1505_v17  ;;  %v1533_v53 = vld [vmem:[#allocation5 + $0x1d8] sm:$0xff]   ;;  %v1537_v57 = vld [vmem:[#allocation5 + $0x1e0] sm:$0xff]   ;;  %v1540_v60 = vld [vmem:[#allocation5 + $0x168] sm:$0xff]   ;;  %v1725_v17 = vmov 0.0  }
  0x6c   :  { %v1534_v54 = vld [vmem:[#allocation5 + $0x118] sm:$0xff]   ;;  %v1538_v58 = vld [vmem:[#allocation5 + $0x120] sm:$0xff]   ;;  %v1541_v61 = vld [vmem:[#allocation5 + $0x1e8] sm:$0xff]  }
  0x6d   :  { %1308 = vmatpush3.bf16.msra.mxu0 %v1506_v18  ;;  %v1535_v55 = vld [vmem:[#allocation5 + $0x198] sm:$0xff]   ;;  %v1539_v59 = vld [vmem:[#allocation5 + $0x1a0] sm:$0xff]   ;;  %v1542_v62 = vld [vmem:[#allocation5 + $0x128] sm:$0xff]  }
  0x6e   :  { %1330 = vmatpush3.bf16.msra.mxu1 %v1507_v19  ;;  %1309 = vmatprep.subr.bf16.mxu0 %v1508_v20  ;;  %v1543_v63 = vld [vmem:[#allocation5 + $0x1a8] sm:$0xff]   ;;  %v1544_v0 = vld [vmem:[#allocation5 + $0x170] sm:$0xff]   ;;  %v1548_v4 = vld [vmem:[#allocation5 + $0x178] sm:$0xff]  }
  0x6f   :  { %1331 = vmatprep.subr.bf16.mxu1 %v1509_v21  ;;  %v1545_v1 = vld [vmem:[#allocation5 + $0x1f0] sm:$0xff]   ;;  %v1549_v5 = vld [vmem:[#allocation5 + $0x1f8] sm:$0xff]   ;;  %v1552_v16 = vld [vmem:[#allocation7] sm:$0xff]  }
  0x70   :  { %v1546_v2 = vld [vmem:[#allocation5 + $0x130] sm:$0xff]   ;;  %v1550_v6 = vld [vmem:[#allocation5 + $0x138] sm:$0xff]   ;;  %v1553_v18 = vld [vmem:[#allocation7 + $0x8] sm:$0xff]  }
  0x71   :  { %1310 = vmatpush3.bf16.msra.mxu0 %v1510_v22  ;;  %v1547_v3 = vld [vmem:[#allocation5 + $0x1b0] sm:$0xff]   ;;  %v1551_v7 = vld [vmem:[#allocation5 + $0x1b8] sm:$0xff]   ;;  %v1556_v21 = vld [vmem:[#allocation7 + $0x20] sm:$0xff]  }
  0x72   :  { %1332 = vmatpush3.bf16.msra.mxu1 %v1511_v23  ;;  %1311 = vmatprep.subr.bf16.mxu0 %v1512_v24  ;;  %v104_v8 = vld [vmem:[#allocation2 + $0x10] sm:$0xff]  ;;  %v105_v12 = vld [vmem:[#allocation2 + $0x18] sm:$0xff]  ;;  %v1557_v22 = vld [vmem:[#allocation7 + $0x28] sm:$0xff]  }
  0x73   :  { %1333 = vmatprep.subr.bf16.mxu1 %v1513_v25  ;;  %v108_v9 = vld [vmem:[#allocation2 + $0x30] sm:$0xff]  ;;  %v109_v13 = vld [vmem:[#allocation2 + $0x38] sm:$0xff]  ;;  %v1560_v25 = vld [vmem:[#allocation8] sm:$0xff]  }
  0x74   :  { %v1204_v10 = vcombine.low %v104_v8, %v108_v9  ;;  %v1205_v11 = vcombine.high %v104_v8, %v108_v9  ;;  %v1206_v14 = vcombine.low %v105_v12, %v109_v13  ;;  %v1207_v15 = vcombine.high %v105_v12, %v109_v13  ;;  %v1554_v19 = vld [vmem:[#allocation7 + $0x10] sm:$0xff]   ;;  %v1555_v20 = vld [vmem:[#allocation7 + $0x18] sm:$0xff]   ;;  %v1199_v33 = vld [vmem:[%s1908_s2] ss:$0 sm:$0xff] }
  0x75   :  { %1312 = vmatpush3.bf16.msra.mxu0 %v1514_v26  ;;  %v1558_v23 = vld [vmem:[#allocation7 + $0x30] sm:$0xff]   ;;  %v1559_v24 = vld [vmem:[#allocation7 + $0x38] sm:$0xff]   ;;  %v1561_v26 = vld [vmem:[#allocation8 + $0x8] sm:$0xff]  }
  0x76   :  { %1334 = vmatpush3.bf16.msra.mxu1 %v1515_v27  ;;  %1313 = vmatprep.subr.bf16.mxu0 %v1516_v28  ;;  %v1562_v27 = vld [vmem:[#allocation8 + $0x10] sm:$0xff]   ;;  %v1563_v28 = vld [vmem:[#allocation8 + $0x18] sm:$0xff]   ;;  %v1572_v9 = vld [vmem:[#allocation10 + $0x20] sm:$0xff]  }
  0x77   :  { %1335 = vmatprep.subr.bf16.mxu1 %v1517_v29  ;;  %v1564_v29 = vld [vmem:[#allocation8 + $0x20] sm:$0xff]   ;;  %v1571_v8 = vld [vmem:[#allocation10 + $0x18] sm:$0xff]  }
  0x79   :  { %1314 = vmatpush3.bf16.msra.mxu0 %v1518_v30  ;;  %v1565_v30 = vld [vmem:[#allocation8 + $0x28] sm:$0xff]  }
  0x7a   :  { %1336 = vmatpush3.bf16.msra.mxu1 %v1519_v31  ;;  %1343 = vmatprep.subr.bf16.mxu0 %v1520_v40 }
  0x7b   :  { %1365 = vmatprep.subr.bf16.mxu1 %v1521_v41 }
  0x7c   :  { %702 = vmatmul.mubr.bf16.vlgmr.msra.gmra.mrb[0].mxu0 %v1200_v35 }
  0x7d   :  { %743 = vmatmul.mubr.bf16.vlgmr.msra.gmra.mrb[0].mxu1 %v1202_v38  ;;  %1344 = vmatpush3.bf16.msra.mxu0 %v1522_v42 }
  0x7e   :  { %1366 = vmatpush3.bf16.msra.mxu1 %v1523_v43  ;;  %1345 = vmatprep.subr.bf16.mxu0 %v1524_v44 }
  0x7f   :  { %1367 = vmatprep.subr.bf16.mxu1 %v1525_v45  ;;  %783 = vmatprep.mubr.bf16.mxu0 %v1205_v11  ;;  %v1272_v11 = vld [vmem:[%s1910_s4] ss:$0 sm:$0xff] }
  0x80   :  { %824 = vmatprep.mubr.bf16.mxu1 %v1207_v15 }
  0x81   :  { %1346 = vmatpush3.bf16.msra.mxu0 %v1526_v46 }
  0x82   :  { %1368 = vmatpush3.bf16.msra.mxu1 %v1527_v47  ;;  %1347 = vmatprep.subr.bf16.mxu0 %v1528_v48 }
  0x83   :  { %1369 = vmatprep.subr.bf16.mxu1 %v1529_v49 }
  0x85   :  { %1348 = vmatpush3.bf16.msra.mxu0 %v1530_v50 }
  0x86   :  { %1370 = vmatpush3.bf16.msra.mxu1 %v1531_v51  ;;  %1349 = vmatprep.subr.bf16.mxu0 %v1532_v52 }
  0x87   :  { %1371 = vmatprep.subr.bf16.mxu1 %v1533_v53 }
  0x89   :  { %1350 = vmatpush3.bf16.msra.mxu0 %v1534_v54 }
  0x8a   :  { %1372 = vmatpush3.bf16.msra.mxu1 %v1535_v55  ;;  %1351 = vmatprep.subr.bf16.mxu0 %v1536_v56 }
  0x8b   :  { %1373 = vmatprep.subr.bf16.mxu1 %v1537_v57 }
  0x8d   :  { %1352 = vmatpush3.bf16.msra.mxu0 %v1538_v58 }
  0x8e   :  { %1374 = vmatpush3.bf16.msra.mxu1 %v1539_v59  ;;  %1353 = vmatprep.subr.bf16.mxu0 %v1540_v60 }
  0x8f   :  { %1375 = vmatprep.subr.bf16.mxu1 %v1541_v61 }
  0x91   :  { %1354 = vmatpush3.bf16.msra.mxu0 %v1542_v62 }
  0x92   :  { %1376 = vmatpush3.bf16.msra.mxu1 %v1543_v63  ;;  %1355 = vmatprep.subr.bf16.mxu0 %v1544_v0 }
  0x93   :  { %1377 = vmatprep.subr.bf16.mxu1 %v1545_v1 }
  0x95   :  { %1356 = vmatpush3.bf16.msra.mxu0 %v1546_v2 }
  0x96   :  { %1378 = vmatpush3.bf16.msra.mxu1 %v1547_v3  ;;  %1357 = vmatprep.subr.bf16.mxu0 %v1548_v4  ;;  %v1566_v3 = vld [vmem:[#allocation8 + $0x30] sm:$0xff]   ;;  %v1567_v4 = vld [vmem:[#allocation8 + $0x38] sm:$0xff]  }
  0x97   :  { %1379 = vmatprep.subr.bf16.mxu1 %v1549_v5  ;;  %v1568_v5 = vld [vmem:[#allocation10] sm:$0xff]  }
  0x99   :  { %1358 = vmatpush3.bf16.msra.mxu0 %v1550_v6  ;;  %v1569_v6 = vld [vmem:[#allocation10 + $0x8] sm:$0xff]  }
  0x9a   :  { %1380 = vmatpush3.bf16.msra.mxu1 %v1551_v7  ;;  %1414 = vmatprep.subr.bf16.mxu0 %v1725_v17  ;;  %v1570_v7 = vld [vmem:[#allocation10 + $0x10] sm:$0xff]  }
  0x9b   :  { %1434 = vmatprep.subr.bf16.mxu1 %v1725_v17 }
  0x9c   :  { %784 = vmatmul.mubr.bf16.vlgmr.msra.gmra.mrb[4].mxu0 %v1204_v10  ;;  %v1573_v10 = vld [vmem:[#allocation10 + $0x28] sm:$0xff]  }
  0x9d   :  { %825 = vmatmul.mubr.bf16.vlgmr.msra.gmra.mrb[4].mxu1 %v1206_v14  ;;  %1415 = vmatpush3.bf16.msra.mxu0 %v1552_v16 }
  0x9e   :  { %1416 = vmatprep.subr.bf16.mxu0 %v1725_v17  ;;  %1430 = vmatprep.mubr.msk.bf16.mxu0 %vm1726_vm0, %v1725_v17 }
  0x9f   :  { %1450 = vmatprep.mubr.msk.bf16.mxu1 %vm1726_vm0, %v1725_v17  ;;  %1435 = vmatpush3.bf16.msra.mxu1 %v1560_v25 }
  0xa0   :  { %1436 = vmatprep.subr.bf16.mxu1 %v1725_v17 }
  0xa1   :  { %1417 = vmatpush3.bf16.msra.mxu0 %v1553_v18 }
  0xa2   :  { %1418 = vmatprep.subr.bf16.mxu0 %v1725_v17 }
  0xa3   :  { %1437 = vmatpush3.bf16.msra.mxu1 %v1561_v26 }
  0xa4   :  { %1438 = vmatprep.subr.bf16.mxu1 %v1725_v17 }
  0xa5   :  { %1419 = vmatpush3.bf16.msra.mxu0 %v1554_v19 }
  0xa6   :  { %1420 = vmatprep.subr.bf16.mxu0 %v1725_v17 }
  0xa7   :  { %1439 = vmatpush3.bf16.msra.mxu1 %v1562_v27 }
  0xa8   :  { %1440 = vmatprep.subr.bf16.mxu1 %v1725_v17 }
  0xa9   :  { %1421 = vmatpush3.bf16.msra.mxu0 %v1555_v20 }
  0xaa   :  { %1422 = vmatprep.subr.bf16.mxu0 %v1725_v17 }
  0xab   :  { %1441 = vmatpush3.bf16.msra.mxu1 %v1563_v28 }
  0xac   :  { %1442 = vmatprep.subr.bf16.mxu1 %v1725_v17 }
  0xad   :  { %1423 = vmatpush3.bf16.msra.mxu0 %v1556_v21 }
  0xae   :  { %1424 = vmatprep.subr.bf16.mxu0 %v1725_v17 }
  0xaf   :  { %1443 = vmatpush3.bf16.msra.mxu1 %v1564_v29 }
  0xb0   :  { %1444 = vmatprep.subr.bf16.mxu1 %v1725_v17 }
  0xb1   :  { %1425 = vmatpush3.bf16.msra.mxu0 %v1557_v22  ;;  %v1574_v22 = vld [vmem:[#allocation10 + $0x30] sm:$0xff]  }
  0xb2   :  { %1426 = vmatprep.subr.bf16.mxu0 %v1725_v17 }
  0xb3   :  { %1445 = vmatpush3.bf16.msra.mxu1 %v1565_v30 }
  0xb4   :  { %1446 = vmatprep.subr.bf16.mxu1 %v1725_v17 }
  0xb5   :  { %1427 = vmatpush3.bf16.msra.mxu0 %v1558_v23  ;;  %v1575_v23 = vld [vmem:[#allocation10 + $0x38] sm:$0xff]  }
  0xb6   :  { %1428 = vmatprep.subr.bf16.mxu0 %v1725_v17 }
  0xb7   :  { %1447 = vmatpush3.bf16.msra.mxu1 %v1566_v3 }
  0xb8   :  { %1448 = vmatprep.subr.bf16.mxu1 %v1725_v17 }
  0xb9   :  { %1429 = vmatpush3.bf16.msra.mxu0 %v1559_v24  ;;  %v1281_v24 = vld [vmem:[%s1912_s6] ss:$0 sm:$0xff]  ;;  %s1686_s6 = scalar_lea.vmem %s1186_s1, 256 }
  0xba   :  { %1454 = vmatprep.subr.bf16.mxu0 %v1725_v17  ;;  %p1687_p12 = scmp.ne.s32.totalorder %s1186_s1, %s1686_s6  ;;  %p1692_p0 = scmp.lt.s32.totalorder %s1686_s6, %s1686_s6 }
  0xbb   :  { %1449 = vmatpush3.bf16.msra.mxu1 %v1567_v4 }
  0xbc   :  { %p1693_p1 = por %p1692_p0, %p1691_p13 }
  0xbe   :  { %p1694_p2 = pnand %p1693_p1, %p1687_p12 }
 0x14f   :  { %v1315_v31 = vpop.f32.mrb[0].mxu0 }
 0x150   :  { %v1337_v32 = vpop.f32.mrb[0].mxu1  ;;  %v1316_v34 = vpop.f32.mrb[1].mxu0 }
 0x151   :  { %v1317_v35 = vadd.f32 %v1316_v34, %v1315_v31  ;;  %v1338_v36 = vpop.f32.mrb[1].mxu1  ;;  %v1318_v37 = vpop.f32.mrb[2].mxu0 }
 0x152   :  { %v1339_v38 = vadd.f32 %v1338_v36, %v1337_v32  ;;  %v1340_v39 = vpop.f32.mrb[2].mxu1  ;;  %v1319_v40 = vpop.f32.mrb[3].mxu0 }
 0x153   :  { %v704_v41 = vadd.f32 %v1317_v35, %v1199_v33  ;;  %v1320_v42 = vadd.f32 %v1319_v40, %v1318_v37  ;;  %v1341_v43 = vpop.f32.mrb[3].mxu1 }
 0x154   :  { %v1342_v44 = vadd.f32 %v1341_v43, %v1340_v39 }
 0x155   :  { %v745_v45 = vadd.f32 %v1339_v38, %v704_v41  ;;  %v707_v46 = vadd.f32 %v1320_v42, %v1199_v33 }
 0x157   :  { %v748_v47 = vadd.f32 %v1342_v44, %v707_v46 }
 0x16f   :  { %v1359_v48 = vpop.f32.mrb[4].mxu0 }
 0x170   :  { %v1381_v49 = vpop.f32.mrb[4].mxu1  ;;  %v1360_v50 = vpop.f32.mrb[5].mxu0 }
 0x171   :  { %v1361_v51 = vadd.f32 %v1360_v50, %v1359_v48  ;;  %v1382_v52 = vpop.f32.mrb[5].mxu1  ;;  %v1362_v53 = vpop.f32.mrb[6].mxu0 }
 0x172   :  { %v1383_v54 = vadd.f32 %v1382_v52, %v1381_v49  ;;  %v1384_v55 = vpop.f32.mrb[6].mxu1  ;;  %v1363_v56 = vpop.f32.mrb[7].mxu0 }
 0x173   :  { %v786_v57 = vadd.f32 %v1361_v51, %v745_v45  ;;  %v1364_v58 = vadd.f32 %v1363_v56, %v1362_v53  ;;  %v1385_v59 = vpop.f32.mrb[7].mxu1 }
 0x174   :  { %v1386_v60 = vadd.f32 %v1385_v59, %v1384_v55 }
 0x175   :  { %v827_v61 = vadd.f32 %v1383_v54, %v786_v57  ;;  %v789_v62 = vadd.f32 %v1364_v58, %v748_v47 }
 0x177   :  { %v830_v63 = vadd.f32 %v1386_v60, %v789_v62  ;;  %v833_v0 = vmax.f32 %v827_v61, 0.0 }
 0x179   :  { %v834_v1 = vmax.f32 %v830_v63, 0.0 }
 0x17b   :  { %v835_v2 = vpack.c.bf16 %v834_v1, %v833_v0 }
 0x17d   :  { %1431 = vmatmul.mubr.bf16.vlgmr.msra.gmra.mrb[8].mxu0 %v835_v2 }
 0x17e   :  { %1470 = vmatprep.mubr.msk.bf16.mxu0 %vm1726_vm0, %v1725_v17  ;;  %1455 = vmatpush3.bf16.msra.mxu0 %v1568_v5 }
 0x17f   :  { %1456 = vmatprep.subr.bf16.mxu0 %v1725_v17 }
 0x182   :  { %1457 = vmatpush3.bf16.msra.mxu0 %v1569_v6 }
 0x183   :  { %1458 = vmatprep.subr.bf16.mxu0 %v1725_v17 }
 0x186   :  { %1459 = vmatpush3.bf16.msra.mxu0 %v1570_v7 }
 0x187   :  { %1460 = vmatprep.subr.bf16.mxu0 %v1725_v17 }
 0x18a   :  { %1461 = vmatpush3.bf16.msra.mxu0 %v1571_v8 }
 0x18b   :  { %1462 = vmatprep.subr.bf16.mxu0 %v1725_v17 }
 0x18e   :  { %1463 = vmatpush3.bf16.msra.mxu0 %v1572_v9 }
 0x18f   :  { %1464 = vmatprep.subr.bf16.mxu0 %v1725_v17 }
 0x192   :  { %1465 = vmatpush3.bf16.msra.mxu0 %v1573_v10 }
 0x193   :  { %1466 = vmatprep.subr.bf16.mxu0 %v1725_v17 }
 0x196   :  { %1467 = vmatpush3.bf16.msra.mxu0 %v1574_v22 }
 0x197   :  { %1468 = vmatprep.subr.bf16.mxu0 %v1725_v17  ;;  %v1290_v17 = vld [vmem:[%s1914_s8] ss:$0 sm:$0xff] }
 0x19a   :  { %1469 = vmatpush3.bf16.msra.mxu0 %v1575_v23 }
 0x250   :  { %v941_v12 = vpop.f32.mrb[8].mxu0 }
 0x251   :  { %v942_v13 = vadd.f32 %v1272_v11, %v941_v12  ;;  %v1432_v14 = vpop.f32.mrb[9].mxu0 }
 0x252   :  { %v944_v15 = vpop.f32.mrb[10].mxu0 }
 0x253   :  { %v945_v16 = vadd.f32 %v1272_v11, %v944_v15  ;;  %v1433_v18 = vpop.f32.mrb[11].mxu0  ;;  %v948_v19 = vmax.f32 %v942_v13, 0.0 }
 0x255   :  { %v949_v20 = vmax.f32 %v945_v16, 0.0 }
 0x257   :  { %v950_v21 = vpack.c.bf16 %v949_v20, %v948_v19 }
 0x259   :  { %1451 = vmatmul.mubr.bf16.vlgmr.msra.gmra.mrb[8].mxu1 %v950_v21 }
 0x32c   :  { %v1056_v25 = vpop.f32.mrb[8].mxu1 }
 0x32d   :  { %v1057_v26 = vadd.f32 %v1281_v24, %v1056_v25  ;;  %v1452_v27 = vpop.f32.mrb[9].mxu1 }
 0x32e   :  { %v1059_v28 = vpop.f32.mrb[10].mxu1 }
 0x32f   :  { %v1060_v29 = vadd.f32 %v1281_v24, %v1059_v28  ;;  %v1453_v30 = vpop.f32.mrb[11].mxu1  ;;  %v1063_v31 = vmax.f32 %v1057_v26, 0.0 }
 0x331   :  { %v1064_v32 = vmax.f32 %v1060_v29, 0.0 }
 0x333   :  { %v1065_v33 = vpack.c.bf16 %v1064_v32, %v1063_v31 }
 0x335   :  { %1471 = vmatmul.mubr.bf16.vlgmr.msra.gmra.mrb[12].mxu0 %v1065_v33 }
 0x408   :  { %v1171_v34 = vpop.f32.mrb[12].mxu0 }
 0x409   :  { %v1172_v35 = vadd.f32 %v1290_v17, %v1171_v34  ;;  %v1472_v36 = vpop.f32.mrb[13].mxu0 }
 0x40a   :  { %v1174_v37 = vpop.f32.mrb[14].mxu0 }
 0x40b   :  { %1178 = vst [vmem:[#allocation11] sm:$0xff] %v1172_v35  ;;  %v1175_v38 = vadd.f32 %v1290_v17, %v1174_v37  ;;  %v1473_v39 = vpop.f32.mrb[15].mxu0 }
 0x40d   :  { %1179 = vst [vmem:[#allocation11 + $0x8] sm:$0xff] %v1175_v38 }
 0x40e   :  { %1697 = shalt.err (!%p1694_p2)
}
 0x40f   :  { %s1698_s14 = scalar_lea.hbm %s1915_s9, 256 }
 0x410   :  { %p1699_p3 = scmp.ne.s32.totalorder %s1915_s9, %s1698_s14  ;;  %p1702_p4 = scmp.lt.u32.totalorder %s1698_s14, %s1915_s9 }
 0x412   :  { %p1704_p5 = pnand %p1702_p4, %p1699_p3 }
 0x414   :  { %1707 = shalt.err (!%p1704_p5)
}
 0x415   :  { %s1728_s26 = smov 128   ;;  %s1729_s18 = smov 8  }
 0x416   :  { %1191 = dma.vmem_to_hbm [thread:$0]  %s1186_s1, 256, %s1915_s9, [#allocation4], %s1728_s26, %s1728_s26, %s1729_s18  }
 0x417   :  { %1714 = dma.done.wait [#allocation4], 256  }
 0x418   :  { %1715 = vsyncadd [#allocation4], 4294967040 }
 0x419   :  { %1195 = vsyncpa [#allocation3], 1 }
 0x41a   :  { %1196 = vsyncpa [#allocation6], 1 }
 0x41b   :  { %1197 = vsyncpa [#allocation9], 1 }
 0x41c   :  { %1198 = vsyncpa [#allocation4], 1 }

</bundles_post_ra>
